<compile_context>
chip_gen: v7x
topology: tpu7x:2x2x1
jax: 0.10.0
libtpu: 0.0.40
codegen_flags: <defaults>
</compile_context>

<pallas_src>
import functools

import jax
import jax.numpy as jnp
from jax.experimental import pallas as pl
from jax.experimental.pallas import tpu as pltpu


def _round_up(x, m):
    return (x + m - 1) // m * m


def _pick_num_steps():
    """1 grid step on single-core v5e, 2 parallel steps elsewhere (v6e/v7x)."""
    try:
        kind = jax.devices()[0].device_kind.lower()
    except Exception:
        return 2
    if "v5e" in kind or "v5 lite" in kind or "v5litepod" in kind:
        return 1
    return 2


def _gcn_fused_kernel(x_ref, m_ref, b_ref, o_ref):
    """One grid step = Bt batch rows; a single fused MXU matmul + f32 epilogue.

    x_ref: (Bt, Kp)  bf16  flattened inputs, row b holds x[b].reshape(L*C)
    m_ref: (Kp, Kp)  bf16  Kronecker operator  A_hat^T (x) W   (VMEM-resident)
    b_ref: (1, Kp)   f32   bias tiled over nodes               (VMEM-resident)
    o_ref: (Bt, Kp)  f32   flattened outputs (lane-dense, unmasked stores)
    """
    acc = jnp.dot(x_ref[...], m_ref[...], preferred_element_type=jnp.float32)
    o_ref[...] = jnp.maximum(acc + b_ref[...], 0.0).astype(o_ref.dtype)


def prepare_params(adj, w, b):
    """One-time parameter prep (hoisted out of the per-call forward).

    y[b, n, d] = sum_{m,c} A[n, m] * W[c, d] * x[b, m, c] + b[d]
    so with x flattened as x_flat[b, m*C + c] the whole layer is one matmul
    against  M[m*C + c, n*C + d] = A[n, m] * W[c, d]  ==  kron(A^T, W).

    Returns:
      m_op:     (Kp, Kp) bf16  fused operator, zero-padded to a lane multiple
      bias_row: (1, Kp)  f32   bias tiled over nodes, zero-padded
    """
    L = adj.shape[0]
    C = w.shape[0]
    K = L * C
    kp = _round_up(K, 128)

    m_full = jnp.kron(adj.astype(jnp.float32).T, w.astype(jnp.float32))
    m_op = jnp.zeros((kp, kp), jnp.bfloat16).at[:K, :K].set(
        m_full.astype(jnp.bfloat16))
    bias_row = jnp.zeros((1, kp), jnp.float32).at[0, :K].set(
        jnp.tile(b.astype(jnp.float32), L))
    return m_op, bias_row


@functools.partial(jax.jit, static_argnames=("n_steps",))
def encoder_layer_forward(x, m_op, bias_row, *, n_steps=2):
    """EncoderLayer.forward: (B, L, C) -> (B, L, C) via one fused MXU matmul."""
    B, L, C = x.shape
    K = L * C
    kp = m_op.shape[0]

    bp = _round_up(B, max(8 * n_steps, 8))   # whole number of aligned steps
    bt = bp // n_steps                       # batch rows per grid step

    # Per-call work is only the bf16 cast / flatten (+ padding if needed).
    x2d = x.reshape(B, K).astype(jnp.bfloat16)
    if bp != B or kp != K:
        x2d = jnp.zeros((bp, kp), jnp.bfloat16).at[:B, :K].set(x2d)

    flops = 2 * bp * kp * kp
    bytes_accessed = bp * kp * 2 + kp * kp * 2 + kp * 4 + bp * kp * 4

    y2d = pl.pallas_call(
        _gcn_fused_kernel,
        out_shape=jax.ShapeDtypeStruct((bp, kp), jnp.float32),
        grid_spec=pltpu.PrefetchScalarGridSpec(
            num_scalar_prefetch=0,
            grid=(n_steps,),
            in_specs=[
                pl.BlockSpec((bt, kp), lambda i: (i, 0)),   # x rows (per step)
                pl.BlockSpec((kp, kp), lambda i: (0, 0)),   # fused op (resident)
                pl.BlockSpec((1, kp), lambda i: (0, 0)),    # bias     (resident)
            ],
            out_specs=pl.BlockSpec((bt, kp), lambda i: (i, 0)),
        ),
        compiler_params=pltpu.CompilerParams(
            dimension_semantics=("parallel",),
        ),
        cost_estimate=pl.CostEstimate(
            flops=flops, transcendentals=0, bytes_accessed=bytes_accessed),
    )(x2d, m_op, bias_row)

    return y2d[:B, :K].reshape(B, L, C).astype(x.dtype)


def reference_forward(x, adj, w, b):
    """Pure-JAX f32 reference of the same GCN encoder layer."""
    xw = jnp.einsum("blc,cd->bld", x, w)
    agg = jnp.einsum("nm,bmd->bnd", adj, xw)
    return jnp.maximum(agg + b[None, None, :], 0.0)


if __name__ == "__main__":
    # (B, L, C) per EncoderLayer.forward.
    B, L, C = 64, 8, 32
    key = jax.random.PRNGKey(0)
    kx, kw, kb, ka = jax.random.split(key, 4)

    x = jax.random.normal(kx, (B, L, C), dtype=jnp.float32)

    # Deterministic parameter init (synthetic, not a checkpoint load).
    w = jax.random.normal(kw, (C, C), dtype=jnp.float32) * (1.0 / jnp.sqrt(C))
    b = jax.random.normal(kb, (C,), dtype=jnp.float32) * 0.01

    # Deterministic adjacency: random graph + self-loops, row-normalized A_hat.
    raw = (jax.random.uniform(ka, (L, L)) > 0.5).astype(jnp.float32)
    adj = jnp.maximum(raw, raw.T) + jnp.eye(L, dtype=jnp.float32)
    adj = adj / jnp.sum(adj, axis=1, keepdims=True)

    # One-time parameter prep, outside the per-call forward.
    m_op, bias_row = prepare_params(adj, w, b)
    m_op, bias_row = jax.block_until_ready((m_op, bias_row))

    n_steps = _pick_num_steps()
    y = encoder_layer_forward(x, m_op, bias_row, n_steps=n_steps)
    y = jax.block_until_ready(y)

    y_ref = reference_forward(x, adj, w, b)
    assert y.shape == (B, L, C)
    # bf16 MXU operands vs f32 reference -> loosened tolerance.
    assert jnp.allclose(y, y_ref, atol=5e-2, rtol=5e-2), "mismatch vs reference"

    print("KERNEL_OK")
</pallas_src>

<mosaic_0001>
module attributes {stable_mosaic.version = 11 : i64} {
  func.func @_gcn_fused_kernel(%arg0: i32, %arg1: memref<32x256xbf16, #tpu.memory_space<vmem>>, %arg2: memref<256x256xbf16, #tpu.memory_space<vmem>>, %arg3: memref<1x256xf32, #tpu.memory_space<vmem>>, %arg4: memref<32x256xf32, #tpu.memory_space<vmem>>) attributes {dimension_semantics = [#tpu.dimension_semantics<parallel>], iteration_bounds = array<i64: 2>, scalar_prefetch = 0 : i64, scratch_operands = 0 : i64, tpu.core_type = #tpu.core_type<tc>, window_params = [{transform_indices = @transform_0, window_bounds = array<i64: 32, 256>}, {pipeline_mode = #tpu.pipeline_mode<synchronous>, transform_indices = @transform_1, window_bounds = array<i64: 256, 256>}, {pipeline_mode = #tpu.pipeline_mode<synchronous>, transform_indices = @transform_2, window_bounds = array<i64: 1, 256>}, {transform_indices = @transform_3, window_bounds = array<i64: 32, 256>}]} {
    %c0 = arith.constant 0 : index
    %c0_0 = arith.constant 0 : index
    %0 = vector.load %arg1[%c0, %c0_0] : memref<32x256xbf16, #tpu.memory_space<vmem>>, vector<32x256xbf16>
    %c0_1 = arith.constant 0 : index
    %c0_2 = arith.constant 0 : index
    %1 = vector.load %arg2[%c0_1, %c0_2] : memref<256x256xbf16, #tpu.memory_space<vmem>>, vector<256x256xbf16>
    %cst = arith.constant dense<0.000000e+00> : vector<32x256xf32>
    %2 = tpu.matmul %0, %1, %cst {dimension_numbers = #tpu.dot_dimension_numbers<[1], [0], [0], [1], [0, 0, 1, 1], [], []>} : vector<32x256xbf16>, vector<256x256xbf16>, vector<32x256xf32> -> vector<32x256xf32>
    %c0_3 = arith.constant 0 : index
    %c0_4 = arith.constant 0 : index
    %3 = vector.load %arg3[%c0_3, %c0_4] : memref<1x256xf32, #tpu.memory_space<vmem>>, vector<1x256xf32>
    %4 = vector.broadcast %3 : vector<1x256xf32> to vector<32x256xf32>
    %5 = arith.addf %2, %4 : vector<32x256xf32>
    %cst_5 = arith.constant 0.000000e+00 : f32
    %6 = vector.broadcast %cst_5 : f32 to vector<32x256xf32>
    %7 = arith.maximumf %5, %6 : vector<32x256xf32>
    %c0_6 = arith.constant 0 : index
    %c0_7 = arith.constant 0 : index
    %8 = vector.load %arg4[%c0_6, %c0_7] : memref<32x256xf32, #tpu.memory_space<vmem>>, vector<32x256xf32>
    tpu.vector_store %arg4[%c0_6, %c0_7], %7 {strides = array<i32>} : memref<32x256xf32, #tpu.memory_space<vmem>>, vector<32x256xf32>,
    return
  }
  func.func @transform_0(%arg0: i32) -> (i32, i32) {
    %c0_i32 = arith.constant 0 : i32
    %c0_i32_0 = arith.constant 0 : i32
    return %arg0, %c0_i32 : i32, i32
  }
  func.func @transform_1(%arg0: i32) -> (i32, i32) {
    %c0_i32 = arith.constant 0 : i32
    %c0_i32_0 = arith.constant 0 : i32
    %c0_i32_1 = arith.constant 0 : i32
    return %c0_i32, %c0_i32_0 : i32, i32
  }
  func.func @transform_2(%arg0: i32) -> (i32, i32) {
    %c0_i32 = arith.constant 0 : i32
    %c0_i32_0 = arith.constant 0 : i32
    %c0_i32_1 = arith.constant 0 : i32
    return %c0_i32, %c0_i32_0 : i32, i32
  }
  func.func @transform_3(%arg0: i32) -> (i32, i32) {
    %c0_i32 = arith.constant 0 : i32
    %c0_i32_0 = arith.constant 0 : i32
    return %arg0, %c0_i32 : i32, i32
  }
}

</mosaic_0001>

<bundles_post_ra>
// kernel: encoder_layer_forward.1
= control target key start
LH: loop header
LB: loop body
LE: loop exit
PB: predicated region body
PF: predicated region fallthrough
CT: control target
= control target key end

     0   :  { %s707_s12 = smov 0   ;;  %s833_s0 = inlined_call_operand.vmem [shape: bf16[64,256], index: 0, kind: input, shape index: {}]   ;;  %s834_s1 = inlined_call_operand.vmem [shape: bf16[256,256], index: 1, kind: input, shape index: {}]   ;;  %s835_s2 = inlined_call_operand.vmem [shape: f32[1,256], index: 2, kind: input, shape index: {}]   ;;  %s836_s3 = inlined_call_operand.vmem [shape: f32[64,256], index: 3, kind: output, shape index: {}]  }
   0x1 LB: > { %s534_s13 = sadd.s32 4294967295, %s685_s12   ;;  %p538_p0 = scmp.ge.s32.totalorder %s685_s12, 1  ;;  %s685_s12 = sphi %s707_s12, %s13_s12  }
   0x2   : > { %p139_p1 = scmp.lt.s32.totalorder %s685_s12, 3 }
   0x4   : > { %p140_p2 = pnand %p538_p0, %p139_p1 }
   0x5   : > { %v625_v0 = vld [vmem:[%s834_s1 + $0x4] ss:$8 sps:$4 sm:$0xff] (!%p140_p2)   ;;  %v627_v1 = vld [vmem:[%s834_s1] ss:$8 sps:$4 sm:$0xff] (!%p140_p2)   ;;  %v628_v2 = vld [vmem:[%s834_s1 + $0x14] ss:$8 sps:$4 sm:$0xff] (!%p140_p2)   ;;  %v217_v36 = vlaneseq (!%p140_p2) }
   0x6   : > { %143 = sbr.rel (%p140_p2) target bundleno = 290 (0x122), region = 32  ;;  %407 = vmatprep.subr.bf16.mxu0 (!%p140_p2), %v625_v0  ;;  %585 = vmatprep.subr.bf16.mxu1 (!%p140_p2), %v625_v0  ;;  %v630_v3 = vld [vmem:[%s834_s1 + $0x10] ss:$8 sps:$4 sm:$0xff] (!%p140_p2)   ;;  %v631_v4 = vld [vmem:[%s834_s1 + $0x24] ss:$8 sps:$4 sm:$0xff] (!%p140_p2)   ;;  %s539_s24 = sshll.u32 (!%p140_p2), %s534_s13, 2 }
   0x7   : > { %408 = vmatpush1.bf16.msra.mxu0 (!%p140_p2), %v627_v1  ;;  %601 = vmatpush1.bf16.msra.mxu1 (!%p140_p2), %v627_v1  ;;  %v633_v5 = vld [vmem:[%s834_s1 + $0x20] ss:$8 sps:$4 sm:$0xff] (!%p140_p2)   ;;  %v634_v6 = vld [vmem:[%s834_s1 + $0x34] ss:$8 sps:$4 sm:$0xff] (!%p140_p2)   ;;  %p166_p3 = scmp.lt.s32.totalorder (!%p140_p2), %s539_s24, 7  ;;  %v218_v37 = vshrl.u32 (!%p140_p2), %v217_v36, 7 }
   0x8   : > { %409 = vmatprep.subr.bf16.mxu0 (!%p140_p2), %v628_v2  ;;  %586 = vmatprep.subr.bf16.mxu1 (!%p140_p2), %v628_v2  ;;  %v636_v7 = vld [vmem:[%s834_s1 + $0x30] ss:$8 sps:$4 sm:$0xff] (!%p140_p2)   ;;  %v637_v8 = vld [vmem:[%s834_s1 + $0x44] ss:$8 sps:$4 sm:$0xff] (!%p140_p2)   ;;  %v639_v9 = vld [vmem:[%s834_s1 + $0x40] ss:$8 sps:$4 sm:$0xff] (!%p140_p2)  }
   0x9   : > { %v640_v10 = vld [vmem:[%s834_s1 + $0x54] ss:$8 sps:$4 sm:$0xff] (!%p140_p2)   ;;  %v642_v11 = vld [vmem:[%s834_s1 + $0x50] ss:$8 sps:$4 sm:$0xff] (!%p140_p2)   ;;  %v643_v12 = vld [vmem:[%s834_s1 + $0x64] ss:$8 sps:$4 sm:$0xff] (!%p140_p2)  }
   0xa   : > { %v645_v14 = vld [vmem:[%s834_s1 + $0x60] ss:$8 sps:$4 sm:$0xff] (!%p140_p2)   ;;  %v646_v16 = vld [vmem:[%s834_s1 + $0x74] ss:$8 sps:$4 sm:$0xff] (!%p140_p2)   ;;  %v648_v17 = vld [vmem:[%s834_s1 + $0x70] ss:$8 sps:$4 sm:$0xff] (!%p140_p2)  }
   0xb   : > { %410 = vmatpush1.bf16.msra.mxu0 (!%p140_p2), %v630_v3  ;;  %602 = vmatpush1.bf16.msra.mxu1 (!%p140_p2), %v630_v3  ;;  %v649_v18 = vld [vmem:[%s834_s1 + $0x84] ss:$8 sps:$4 sm:$0xff] (!%p140_p2)   ;;  %v651_v19 = vld [vmem:[%s834_s1 + $0x80] ss:$8 sps:$4 sm:$0xff] (!%p140_p2)   ;;  %v652_v20 = vld [vmem:[%s834_s1 + $0x94] ss:$8 sps:$4 sm:$0xff] (!%p140_p2)  }
   0xc   : > { %411 = vmatprep.subr.bf16.mxu0 (!%p140_p2), %v631_v4  ;;  %587 = vmatprep.subr.bf16.mxu1 (!%p140_p2), %v631_v4  ;;  %v654_v21 = vld [vmem:[%s834_s1 + $0x90] ss:$8 sps:$4 sm:$0xff] (!%p140_p2)   ;;  %v655_v22 = vld [vmem:[%s834_s1 + $0xa4] ss:$8 sps:$4 sm:$0xff] (!%p140_p2)   ;;  %v657_v23 = vld [vmem:[%s834_s1 + $0xa0] ss:$8 sps:$4 sm:$0xff] (!%p140_p2)  }
   0xd   : > { %s838_s24 = smov (!%p166_p3, %s539_s24), 7  ;;  %v658_v24 = vld [vmem:[%s834_s1 + $0xb4] ss:$8 sps:$4 sm:$0xff]   ;;  %v660_v25 = vld [vmem:[%s834_s1 + $0xb0] ss:$8 sps:$4 sm:$0xff]   ;;  %v219_v38 = vsub.s32 0, %v218_v37 }
   0xe   : > { %s583_s10 = sshll.u32 %s838_s24, 3  ;;  %v661_v26 = vld [vmem:[%s834_s1 + $0xc4] ss:$8 sps:$4 sm:$0xff]   ;;  %v663_v27 = vld [vmem:[%s834_s1 + $0xc0] ss:$8 sps:$4 sm:$0xff]   ;;  %v223_v40 = vsub.s32 1, %v218_v37 }
   0xf   : > { %412 = vmatpush1.bf16.msra.mxu0 %v633_v5  ;;  %603 = vmatpush1.bf16.msra.mxu1 %v633_v5  ;;  %s757_s16 = scalar_lea.vmem %s833_s0, %s583_s10  ;;  %v664_v28 = vld [vmem:[%s834_s1 + $0xd4] ss:$8 sps:$4 sm:$0xff]   ;;  %v666_v29 = vld [vmem:[%s834_s1 + $0xd0] ss:$8 sps:$4 sm:$0xff]   ;;  %v667_v30 = vld [vmem:[%s834_s1 + $0xe4] ss:$8 sps:$4 sm:$0xff]  }
  0x10   : > { %413 = vmatprep.subr.bf16.mxu0 %v634_v6  ;;  %588 = vmatprep.subr.bf16.mxu1 %v634_v6  ;;  %v675_v13 = vld [vmem:[%s757_s16 + $0x4] ss:$8 sps:$4 sm:$0xff]   ;;  %v678_v15 = vld [vmem:[%s757_s16 + $0x14] ss:$8 sps:$4 sm:$0xff]   ;;  %v669_v31 = vld [vmem:[%s834_s1 + $0xe0] ss:$8 sps:$4 sm:$0xff]  }
  0x11   : > { %439 = vmatprep.mubr.bf16.mxu0 %v675_v13  ;;  %449 = vmatprep.mubr.bf16.mxu1 %v678_v15  ;;  %v670_v32 = vld [vmem:[%s834_s1 + $0xf4] ss:$8 sps:$4 sm:$0xff]   ;;  %v672_v33 = vld [vmem:[%s834_s1 + $0xf0] ss:$8 sps:$4 sm:$0xff]   ;;  %v673_v34 = vld [vmem:[%s757_s16] ss:$8 sps:$4 sm:$0xff]  }
  0x12   : > { %v676_v35 = vld [vmem:[%s757_s16 + $0x10] ss:$8 sps:$4 sm:$0xff]   ;;  %v215_v39 = vld [vmem:[%s835_s2] sm:$0x3]  ;;  %s584_s9 = sshll.u32 %s838_s24, 4 }
  0x13   : > { %414 = vmatpush1.bf16.msra.mxu0 %v636_v7  ;;  %604 = vmatpush1.bf16.msra.mxu1 %v636_v7  ;;  %v220_v41 = vrot.slane %v215_v39, %v219_v38  ;;  %v224_v42 = vrot.slane %v215_v39, %v223_v40  ;;  %s177_s11 = scalar_lea.vmem %s836_s3, %s584_s9 }
  0x14   : > { %415 = vmatprep.subr.bf16.mxu0 %v637_v8  ;;  %589 = vmatprep.subr.bf16.mxu1 %v637_v8 }
  0x17   : > { %416 = vmatpush1.bf16.msra.mxu0 %v639_v9  ;;  %605 = vmatpush1.bf16.msra.mxu1 %v639_v9 }
  0x18   : > { %417 = vmatprep.subr.bf16.mxu0 %v640_v10  ;;  %590 = vmatprep.subr.bf16.mxu1 %v640_v10 }
  0x1b   : > { %418 = vmatpush1.bf16.msra.mxu0 %v642_v11  ;;  %606 = vmatpush1.bf16.msra.mxu1 %v642_v11 }
  0x1c   : > { %419 = vmatprep.subr.bf16.mxu0 %v643_v12  ;;  %591 = vmatprep.subr.bf16.mxu1 %v643_v12 }
  0x1f   : > { %420 = vmatpush1.bf16.msra.mxu0 %v645_v14  ;;  %607 = vmatpush1.bf16.msra.mxu1 %v645_v14 }
  0x20   : > { %421 = vmatprep.subr.bf16.mxu0 %v646_v16  ;;  %592 = vmatprep.subr.bf16.mxu1 %v646_v16 }
  0x23   : > { %422 = vmatpush1.bf16.msra.mxu0 %v648_v17  ;;  %608 = vmatpush1.bf16.msra.mxu1 %v648_v17 }
  0x24   : > { %423 = vmatprep.subr.bf16.mxu0 %v649_v18  ;;  %593 = vmatprep.subr.bf16.mxu1 %v649_v18 }
  0x27   : > { %424 = vmatpush1.bf16.msra.mxu0 %v651_v19  ;;  %609 = vmatpush1.bf16.msra.mxu1 %v651_v19 }
  0x28   : > { %425 = vmatprep.subr.bf16.mxu0 %v652_v20  ;;  %594 = vmatprep.subr.bf16.mxu1 %v652_v20 }
  0x2b   : > { %426 = vmatpush1.bf16.msra.mxu0 %v654_v21  ;;  %610 = vmatpush1.bf16.msra.mxu1 %v654_v21 }
  0x2c   : > { %427 = vmatprep.subr.bf16.mxu0 %v655_v22  ;;  %595 = vmatprep.subr.bf16.mxu1 %v655_v22 }
  0x2f   : > { %428 = vmatpush1.bf16.msra.mxu0 %v657_v23  ;;  %611 = vmatpush1.bf16.msra.mxu1 %v657_v23 }
  0x30   : > { %429 = vmatprep.subr.bf16.mxu0 %v658_v24  ;;  %596 = vmatprep.subr.bf16.mxu1 %v658_v24 }
  0x33   : > { %430 = vmatpush1.bf16.msra.mxu0 %v660_v25  ;;  %612 = vmatpush1.bf16.msra.mxu1 %v660_v25 }
  0x34   : > { %431 = vmatprep.subr.bf16.mxu0 %v661_v26  ;;  %597 = vmatprep.subr.bf16.mxu1 %v661_v26 }
  0x37   : > { %432 = vmatpush1.bf16.msra.mxu0 %v663_v27  ;;  %613 = vmatpush1.bf16.msra.mxu1 %v663_v27 }
  0x38   : > { %433 = vmatprep.subr.bf16.mxu0 %v664_v28  ;;  %598 = vmatprep.subr.bf16.mxu1 %v664_v28 }
  0x3b   : > { %434 = vmatpush1.bf16.msra.mxu0 %v666_v29  ;;  %614 = vmatpush1.bf16.msra.mxu1 %v666_v29 }
  0x3c   : > { %435 = vmatprep.subr.bf16.mxu0 %v667_v30  ;;  %599 = vmatprep.subr.bf16.mxu1 %v667_v30 }
  0x3f   : > { %436 = vmatpush1.bf16.msra.mxu0 %v669_v31  ;;  %615 = vmatpush1.bf16.msra.mxu1 %v669_v31 }
  0x40   : > { %437 = vmatprep.subr.bf16.mxu0 %v670_v32  ;;  %600 = vmatprep.subr.bf16.mxu1 %v670_v32 }
  0x43   : > { %438 = vmatpush1.bf16.msra.mxu0 %v672_v33  ;;  %616 = vmatpush1.bf16.msra.mxu1 %v672_v33 }
  0x46   : > { %440 = vmatmul.mubr.bf16.vlgmr.msra.gmra.mrb[0].mxu0 %v673_v34  ;;  %450 = vmatmul.mubr.bf16.vlgmr.msra.gmra.mrb[0].mxu1 %v676_v35 }
 0x119   : > { %v441_v43 = vpop.f32.mrb[0].mxu0  ;;  %v451_v44 = vpop.f32.mrb[0].mxu1 }
 0x11a   : > { %v442_v45 = vadd.f32 %v441_v43, %v220_v41  ;;  %v452_v46 = vadd.f32 %v451_v44, %v220_v41  ;;  %v443_v47 = vpop.f32.mrb[1].mxu0  ;;  %v453_v48 = vpop.f32.mrb[1].mxu1 }
 0x11b   : > { %v444_v49 = vadd.f32 %v443_v47, %v224_v42  ;;  %v445_v50 = vpop.f32.mrb[2].mxu0  ;;  %v455_v51 = vpop.f32.mrb[2].mxu1  ;;  %v454_v53 = vadd.f32 %v453_v48, %v224_v42 }
 0x11c   : > { %v460_v52 = vmax.f32 %v442_v45, 0.0  ;;  %v446_v54 = vadd.f32 %v445_v50, %v220_v41  ;;  %v456_v55 = vadd.f32 %v455_v51, %v220_v41  ;;  %v447_v56 = vpop.f32.mrb[3].mxu0  ;;  %v457_v57 = vpop.f32.mrb[3].mxu1  ;;  %v464_v58 = vmax.f32 %v452_v46, 0.0 }
 0x11d   : > { %v461_v59 = vmax.f32 %v444_v49, 0.0  ;;  %v448_v60 = vadd.f32 %v447_v56, %v224_v42  ;;  %v458_v61 = vadd.f32 %v457_v57, %v224_v42  ;;  %v465_v0 = vmax.f32 %v454_v53, 0.0 }
 0x11e   : > { %468 = vst [vmem:[%s177_s11] sm:$0xff] %v460_v52  ;;  %v462_v62 = vmax.f32 %v446_v54, 0.0  ;;  %v466_v1 = vmax.f32 %v456_v55, 0.0  ;;  %472 = vst [vmem:[%s177_s11 + $0x20] sm:$0xff] %v464_v58 }
 0x11f   : > { %469 = vst [vmem:[%s177_s11 + $0x8] sm:$0xff] %v461_v59  ;;  %v463_v63 = vmax.f32 %v448_v60, 0.0  ;;  %v467_v2 = vmax.f32 %v458_v61, 0.0  ;;  %473 = vst [vmem:[%s177_s11 + $0x28] sm:$0xff] %v465_v0 }
 0x120   : > { %470 = vst [vmem:[%s177_s11 + $0x10] sm:$0xff] %v462_v62  ;;  %474 = vst [vmem:[%s177_s11 + $0x30] sm:$0xff] %v466_v1 }
 0x121   : > { %471 = vst [vmem:[%s177_s11 + $0x18] sm:$0xff] %v463_v63  ;;  %475 = vst [vmem:[%s177_s11 + $0x38] sm:$0xff] %v467_v2 }
 0x122 PF: > { %s13_s12 = sadd.s32 1, %s685_s12  }
 0x123   : > { %p10_p4 = scmp.ge.s32.totalorder %s13_s12, 4  }
 0x125   :  { %12 = sbr.rel (!%p10_p4) target bundleno = 1 (0x1), region = 62 }

</bundles_post_ra>
